<compile_context>
chip_gen: v6e
topology: v6e:2x2x1
jax: 0.10.0
libtpu: 0.0.40
codegen_flags: <defaults>
</compile_context>

<pallas_src>
import jax
import jax.numpy as jnp
from jax.experimental import pallas as pl
from jax.experimental.pallas import tpu as pltpu


# ----------------------------------------------------------------------------
# impl="dma": raw HBM->HBM copy, a few large DMAs, no VMEM staging.
# ----------------------------------------------------------------------------
def _make_dma_copy_kernel(spans):
    """spans: static list of (start, stop) leading-axis ranges covering the array."""

    def kernel(x_hbm, o_hbm, sems):
        copies = []
        for idx, (start, stop) in enumerate(spans):
            cp = pltpu.make_async_copy(
                x_hbm.at[start:stop], o_hbm.at[start:stop], sems.at[idx]
            )
            cp.start()
            copies.append(cp)
        for cp in copies:  # all transfers in flight before the first wait
            cp.wait()

    return kernel


def _dma_copy(x, *, max_chunks=8):
    lead = x.shape[0]
    n = int(min(max_chunks, max(1, lead)))
    bounds = [(i * lead) // n for i in range(n + 1)]
    spans = [(s, e) for s, e in zip(bounds[:-1], bounds[1:]) if e > s]
    nbytes = x.size * jnp.dtype(x.dtype).itemsize

    return pl.pallas_call(
        _make_dma_copy_kernel(spans),
        out_shape=jax.ShapeDtypeStruct(x.shape, x.dtype),
        in_specs=[pl.BlockSpec(memory_space=pl.ANY)],
        out_specs=pl.BlockSpec(memory_space=pl.ANY),
        scratch_shapes=[pltpu.SemaphoreType.DMA((len(spans),))],
        compiler_params=pltpu.CompilerParams(has_side_effects=True),
        cost_estimate=pl.CostEstimate(
            flops=0, transcendentals=0, bytes_accessed=2 * nbytes
        ),
    )(x)


# ----------------------------------------------------------------------------
# impl="pipeline": BlockSpec-pipelined VMEM copy (fallback / reference path).
# ----------------------------------------------------------------------------
def _copy_block_kernel(x_ref, o_ref):
    o_ref[...] = x_ref[...]


def _pipeline_copy(x, *, max_block_bytes=8 * 1024 * 1024):
    total = x.size
    itemsize = jnp.dtype(x.dtype).itemsize
    sub = 8 * max(1, 4 // itemsize)  # f32: 8, bf16: 16, int8/fp8: 32 sublanes

    # Lane-dense factorization total = rows * cols with cols % 128 == 0 when one
    # exists; otherwise keep the trailing extent whole (legal for BlockSpec even
    # when not 128-aligned) -- never pad, never add HBM round trips.
    cols = next((c for c in (1024, 512, 256, 128) if total % c == 0), None)
    if cols is None:
        rows, cols = x.shape[0], total // x.shape[0]
    else:
        rows = total // cols
    slab = jnp.reshape(x, (rows, cols))  # metadata only (contiguous input)

    # Largest sublane-aligned block <= max_block_bytes; cdiv grid lets the last
    # block be partial (masked) so awkward row counts never shrink the block.
    block_rows = max(1, max_block_bytes // (cols * itemsize))
    if block_rows >= rows:
        block_rows = rows  # single full-extent block
    else:
        block_rows = max(sub, (block_rows // sub) * sub)
    grid = (pl.cdiv(rows, block_rows),)

    return pl.pallas_call(
        _copy_block_kernel,
        out_shape=jax.ShapeDtypeStruct((rows, cols), x.dtype),
        grid_spec=pltpu.PrefetchScalarGridSpec(
            num_scalar_prefetch=0,
            grid=grid,
            in_specs=[pl.BlockSpec((block_rows, cols), lambda i: (i, 0))],
            out_specs=pl.BlockSpec((block_rows, cols), lambda i: (i, 0)),
        ),
        compiler_params=pltpu.CompilerParams(
            dimension_semantics=("parallel",),       # megacore sharding where available
            vmem_limit_bytes=48 * 1024 * 1024,       # 2 in + 2 out 8 MiB buffers + headroom
        ),
        cost_estimate=pl.CostEstimate(
            flops=0, transcendentals=0, bytes_accessed=2 * total * itemsize
        ),
    )(slab)


# ----------------------------------------------------------------------------
# Public wrapper: Reshaper(dout).forward(x)  ==  x.view(B, *dout)
# ----------------------------------------------------------------------------
def reshaper_forward(x, dout=(-1,), *, impl="dma"):
    B = x.shape[0]
    out_shape = (B,) + tuple(dout)  # jnp.reshape resolves -1 like torch.view
    if impl == "metadata":
        return jnp.reshape(x, out_shape)  # zero HBM traffic (production path)
    y = _dma_copy(x) if impl == "dma" else _pipeline_copy(x)
    return jnp.reshape(y, out_shape)


if __name__ == "__main__":
    key = jax.random.PRNGKey(0)
    # Small NCHW input consistent with typical Reshaper use: flatten conv
    # feature maps before a dense layer.
    x = jax.random.normal(key, (2, 4, 16, 16), dtype=jnp.float32)
    ref = jnp.reshape(x, (x.shape[0], -1))

    try:
        y = jax.block_until_ready(reshaper_forward(x, dout=(-1,), impl="dma"))
    except Exception:
        # Robustness across Pallas/Mosaic versions: if raw HBM->HBM DMA is
        # rejected by the compiler, fall back to the pipelined VMEM copy.
        y = jax.block_until_ready(reshaper_forward(x, dout=(-1,), impl="pipeline"))

    assert y.shape == (2, 4 * 16 * 16), y.shape
    assert jnp.array_equal(y, ref), "mismatch vs reference reshape"
    print("KERNEL_OK")
</pallas_src>

<mosaic_0001>
module attributes {stable_mosaic.version = 11 : i64} {
  func.func @kernel(%arg0: memref<2x4x16x16xf32, #tpu.memory_space<any>>, %arg1: memref<2x4x16x16xf32, #tpu.memory_space<any>>, %arg2: memref<2x!tpu.dma_semaphore, #tpu.memory_space<semaphore_mem>>) attributes {dimension_semantics = [], scalar_prefetch = 0 : i64, scratch_operands = 1 : i64, tpu.core_type = #tpu.core_type<tc>} {
    %c0_i32 = arith.constant 0 : i32
    %c0_i32_0 = arith.constant 0 : i32
    %c0_i32_1 = arith.constant 0 : i32
    %c0_i32_2 = arith.constant 0 : i32
    %c0_i32_3 = arith.constant 0 : i32
    %0 = tpu.memref_slice %arg0[%c0_i32_0, %c0_i32_1, %c0_i32_2, %c0_i32_3] : memref<2x4x16x16xf32, #tpu.memory_space<any>> -> memref<1x4x16x16xf32, #tpu.memory_space<any>>
    %c0_i32_4 = arith.constant 0 : i32
    %c0_i32_5 = arith.constant 0 : i32
    %c0_i32_6 = arith.constant 0 : i32
    %c0_i32_7 = arith.constant 0 : i32
    %1 = tpu.memref_slice %arg1[%c0_i32_4, %c0_i32_5, %c0_i32_6, %c0_i32_7] : memref<2x4x16x16xf32, #tpu.memory_space<any>> -> memref<1x4x16x16xf32, #tpu.memory_space<any>>
    %2 = tpu.memref_slice %arg2[%c0_i32] : memref<2x!tpu.dma_semaphore, #tpu.memory_space<semaphore_mem>> -> memref<1x!tpu.dma_semaphore, #tpu.memory_space<semaphore_mem>>
    %3 = tpu.memref_squeeze %2 : memref<1x!tpu.dma_semaphore, #tpu.memory_space<semaphore_mem>> -> memref<!tpu.dma_semaphore, #tpu.memory_space<semaphore_mem>>
    tpu.enqueue_dma source(%0 : memref<1x4x16x16xf32, #tpu.memory_space<any>>) target(%1 : memref<1x4x16x16xf32, #tpu.memory_space<any>>) target_semaphore(%3 : memref<!tpu.dma_semaphore, #tpu.memory_space<semaphore_mem>>)
    %c1_i32 = arith.constant 1 : i32
    %c1_i32_8 = arith.constant 1 : i32
    %c0_i32_9 = arith.constant 0 : i32
    %c0_i32_10 = arith.constant 0 : i32
    %c0_i32_11 = arith.constant 0 : i32
    %4 = tpu.memref_slice %arg0[%c1_i32_8, %c0_i32_9, %c0_i32_10, %c0_i32_11] : memref<2x4x16x16xf32, #tpu.memory_space<any>> -> memref<1x4x16x16xf32, #tpu.memory_space<any>>
    %c1_i32_12 = arith.constant 1 : i32
    %c0_i32_13 = arith.constant 0 : i32
    %c0_i32_14 = arith.constant 0 : i32
    %c0_i32_15 = arith.constant 0 : i32
    %5 = tpu.memref_slice %arg1[%c1_i32_12, %c0_i32_13, %c0_i32_14, %c0_i32_15] : memref<2x4x16x16xf32, #tpu.memory_space<any>> -> memref<1x4x16x16xf32, #tpu.memory_space<any>>
    %6 = tpu.memref_slice %arg2[%c1_i32] : memref<2x!tpu.dma_semaphore, #tpu.memory_space<semaphore_mem>> -> memref<1x!tpu.dma_semaphore, #tpu.memory_space<semaphore_mem>>
    %7 = tpu.memref_squeeze %6 : memref<1x!tpu.dma_semaphore, #tpu.memory_space<semaphore_mem>> -> memref<!tpu.dma_semaphore, #tpu.memory_space<semaphore_mem>>
    tpu.enqueue_dma source(%4 : memref<1x4x16x16xf32, #tpu.memory_space<any>>) target(%5 : memref<1x4x16x16xf32, #tpu.memory_space<any>>) target_semaphore(%7 : memref<!tpu.dma_semaphore, #tpu.memory_space<semaphore_mem>>)
    %c0_i32_16 = arith.constant 0 : i32
    %c0_i32_17 = arith.constant 0 : i32
    %c0_i32_18 = arith.constant 0 : i32
    %c0_i32_19 = arith.constant 0 : i32
    %c0_i32_20 = arith.constant 0 : i32
    %8 = tpu.memref_slice %arg0[%c0_i32_17, %c0_i32_18, %c0_i32_19, %c0_i32_20] : memref<2x4x16x16xf32, #tpu.memory_space<any>> -> memref<1x4x16x16xf32, #tpu.memory_space<any>>
    %c0_i32_21 = arith.constant 0 : i32
    %c0_i32_22 = arith.constant 0 : i32
    %c0_i32_23 = arith.constant 0 : i32
    %c0_i32_24 = arith.constant 0 : i32
    %9 = tpu.memref_slice %arg1[%c0_i32_21, %c0_i32_22, %c0_i32_23, %c0_i32_24] : memref<2x4x16x16xf32, #tpu.memory_space<any>> -> memref<1x4x16x16xf32, #tpu.memory_space<any>>
    %10 = tpu.memref_slice %arg2[%c0_i32_16] : memref<2x!tpu.dma_semaphore, #tpu.memory_space<semaphore_mem>> -> memref<1x!tpu.dma_semaphore, #tpu.memory_space<semaphore_mem>>
    %11 = tpu.memref_squeeze %10 : memref<1x!tpu.dma_semaphore, #tpu.memory_space<semaphore_mem>> -> memref<!tpu.dma_semaphore, #tpu.memory_space<semaphore_mem>>
    tpu.wait_dma2 semaphore(%11 : memref<!tpu.dma_semaphore, #tpu.memory_space<semaphore_mem>>) src(%8 : memref<1x4x16x16xf32, #tpu.memory_space<any>>) dst(%9 : memref<1x4x16x16xf32, #tpu.memory_space<any>>)
    %c1_i32_25 = arith.constant 1 : i32
    %c1_i32_26 = arith.constant 1 : i32
    %c0_i32_27 = arith.constant 0 : i32
    %c0_i32_28 = arith.constant 0 : i32
    %c0_i32_29 = arith.constant 0 : i32
    %12 = tpu.memref_slice %arg0[%c1_i32_26, %c0_i32_27, %c0_i32_28, %c0_i32_29] : memref<2x4x16x16xf32, #tpu.memory_space<any>> -> memref<1x4x16x16xf32, #tpu.memory_space<any>>
    %c1_i32_30 = arith.constant 1 : i32
    %c0_i32_31 = arith.constant 0 : i32
    %c0_i32_32 = arith.constant 0 : i32
    %c0_i32_33 = arith.constant 0 : i32
    %13 = tpu.memref_slice %arg1[%c1_i32_30, %c0_i32_31, %c0_i32_32, %c0_i32_33] : memref<2x4x16x16xf32, #tpu.memory_space<any>> -> memref<1x4x16x16xf32, #tpu.memory_space<any>>
    %14 = tpu.memref_slice %arg2[%c1_i32_25] : memref<2x!tpu.dma_semaphore, #tpu.memory_space<semaphore_mem>> -> memref<1x!tpu.dma_semaphore, #tpu.memory_space<semaphore_mem>>
    %15 = tpu.memref_squeeze %14 : memref<1x!tpu.dma_semaphore, #tpu.memory_space<semaphore_mem>> -> memref<!tpu.dma_semaphore, #tpu.memory_space<semaphore_mem>>
    tpu.wait_dma2 semaphore(%15 : memref<!tpu.dma_semaphore, #tpu.memory_space<semaphore_mem>>) src(%12 : memref<1x4x16x16xf32, #tpu.memory_space<any>>) dst(%13 : memref<1x4x16x16xf32, #tpu.memory_space<any>>)
    return
  }
}

module attributes {stable_mosaic.version = 11 : i64} {
  func.func @_copy_block_kernel(%arg0: i32, %arg1: memref<2x1024xf32, #tpu.memory_space<vmem>>, %arg2: memref<2x1024xf32, #tpu.memory_space<vmem>>) attributes {dimension_semantics = [#tpu.dimension_semantics<parallel>], iteration_bounds = array<i64: 1>, scalar_prefetch = 0 : i64, scratch_operands = 0 : i64, tpu.core_type = #tpu.core_type<tc>, window_params = [{transform_indices = @transform_0, window_bounds = array<i64: 2, 1024>}, {transform_indices = @transform_1, window_bounds = array<i64: 2, 1024>}]} {
    %c0 = arith.constant 0 : index
    %c0_0 = arith.constant 0 : index
    %0 = vector.load %arg1[%c0, %c0_0] : memref<2x1024xf32, #tpu.memory_space<vmem>>, vector<2x1024xf32>
    %c0_1 = arith.constant 0 : index
    %c0_2 = arith.constant 0 : index
    %1 = vector.load %arg2[%c0_1, %c0_2] : memref<2x1024xf32, #tpu.memory_space<vmem>>, vector<2x1024xf32>
    tpu.vector_store %arg2[%c0_1, %c0_2], %0 {strides = array<i32>} : memref<2x1024xf32, #tpu.memory_space<vmem>>, vector<2x1024xf32>,
    return
  }
  func.func @transform_0(%arg0: i32) -> (i32, i32) {
    %c0_i32 = arith.constant 0 : i32
    %c0_i32_0 = arith.constant 0 : i32
    return %arg0, %c0_i32 : i32, i32
  }
  func.func @transform_1(%arg0: i32) -> (i32, i32) {
    %c0_i32 = arith.constant 0 : i32
    %c0_i32_0 = arith.constant 0 : i32
    return %arg0, %c0_i32 : i32, i32
  }
}

</mosaic_0001>

<bundles_post_ra>
// kernel: tpu_custom_call.1
= control target key start
LH: loop header
LB: loop body
LE: loop exit
PB: predicated region body
PF: predicated region fallthrough
CT: control target
= control target key end

     0   :  { %6 = vsyncpa [#allocation3], 0  ;;  %s104_s0 = inlined_call_operand.hbm [shape: f32[2,1024], index: 0, kind: input, shape index: {}]   ;;  %s105_s1 = inlined_call_operand.hbm [shape: f32[2,1024], index: 1, kind: output, shape index: {}]  }
   0x1   :  { %7 = vsyncpa [#allocation4], 0  ;;  %s86_s6 = smov [#allocation2]  }
   0x2   :  { %s14_s7 = sshll.u32 %s86_s6, 4  ;;  %s15_s7 = int_to_ptr.vmem [resolvable:$true] %s14_s7 }
   0x3   :  { %s50_s8 = scalar_lea.vmem %s15_s7, 256  ;;  %p55_p1 = scmp.lt.s32.totalorder %s15_s7, %s15_s7 }
   0x4   :  { %p51_p0 = scmp.ne.s32.totalorder %s15_s7, %s50_s8  ;;  %p56_p2 = scmp.lt.s32.totalorder %s50_s8, %s50_s8 }
   0x6   :  { %p57_p3 = por %p56_p2, %p55_p1 }
   0x8   :  { %p58_p4 = pnand %p57_p3, %p51_p0 }
   0xa   :  { %61 = shalt.err (!%p58_p4)
}
   0xb   :  { %17 = dma.hbm_to_vmem [thread:$0]  %s104_s0, 256, %s15_s7, [#allocation3]  }
   0xc   :  { %82 = dma.done.wait [#allocation3], 256  }
   0xd   :  { %83 = vsyncadd [#allocation3], 4294967040  ;;  %s87_s11 = smov [#allocation5]   ;;  %v21_v0 = vld [vmem:[#allocation2] sm:$0xff]  ;;  %v22_v1 = vld [vmem:[#allocation2 + $0x8] sm:$0xff] }
   0xe   :  { %s31_s12 = sshll.u32 %s87_s11, 4  ;;  %23 = vst [vmem:[#allocation5] sm:$0xff] %v21_v0  ;;  %24 = vst [vmem:[#allocation5 + $0x8] sm:$0xff] %v22_v1  ;;  %s32_s12 = int_to_ptr.vmem [resolvable:$true] %s31_s12 }
   0xf   :  { %s62_s13 = scalar_lea.vmem %s32_s12, 256  ;;  %p67_p6 = scmp.lt.s32.totalorder %s32_s12, %s32_s12 }
  0x10   :  { %p63_p5 = scmp.ne.s32.totalorder %s32_s12, %s62_s13  ;;  %p68_p7 = scmp.lt.s32.totalorder %s62_s13, %s62_s13 }
  0x12   :  { %p69_p8 = por %p68_p7, %p67_p6 }
  0x14   :  { %p70_p9 = pnand %p69_p8, %p63_p5 }
  0x16   :  { %73 = shalt.err (!%p70_p9)
}
  0x17   :  { %34 = dma.vmem_to_hbm [thread:$0]  %s32_s12, 256, %s105_s1, [#allocation4]  }
  0x18   :  { %84 = dma.done.wait [#allocation4], 256  }
  0x19   :  { %85 = vsyncadd [#allocation4], 4294967040 }
  0x1a   :  { %38 = vsyncpa [#allocation3], 1 }
  0x1b   :  { %39 = vsyncpa [#allocation4], 1 }

</bundles_post_ra>
